<compile_context>
chip_gen: v7x
topology: tpu7x:2x2x1
jax: 0.10.0
libtpu: 0.0.40
codegen_flags: <defaults>
</compile_context>

<pallas_src>
import jax
import jax.numpy as jnp
from jax.experimental import pallas as pl
from jax.experimental.pallas import tpu as pltpu

LANE = 128          # padded feature / hidden width (lane-dense)
NUM_LAYERS = 3


def _round_up(n, m):
    return ((n + m - 1) // m) * m


def _pad2(a, rows, cols, dtype=jnp.float32):
    out = jnp.zeros((rows, cols), dtype)
    return out.at[:a.shape[0], :a.shape[1]].set(a.astype(dtype))


# ---------------------------------------------------------------------------
# Small-graph fast path: everything resident in VMEM, single invocation,
# layer loop unrolled inside the kernel.
# ---------------------------------------------------------------------------
def gcn_small_kernel(a_ref, hw0_ref, pool_ref, w_ref, b_ref, fc_ref, o_ref):
    a = a_ref[...]                        # (Np, Np) bf16
    hw = hw0_ref[...]                     # (Np, Hp) bf16  == X @ W1
    h = None
    for l in range(NUM_LAYERS):
        agg = jnp.dot(a, hw, preferred_element_type=jnp.float32)
        h = jnp.maximum(agg + b_ref[l], 0.0)               # (Np, Hp) f32
        if l < NUM_LAYERS - 1:
            hw = jnp.dot(h.astype(jnp.bfloat16), w_ref[l],
                         preferred_element_type=jnp.float32
                         ).astype(jnp.bfloat16)
    pooled = jnp.dot(pool_ref[...], h, preferred_element_type=jnp.float32)
    g = o_ref.shape[0]
    wf = fc_ref[0:1, :]                   # (1, Hp), zero-padded past hidden
    bf = fc_ref[1:2, 0:1]                 # (1, 1)
    # fc head as a VPU lane reduction (an MXU matmul of width 1 wastes a pass).
    o_ref[...] = jnp.sum(pooled[:g] * wf, axis=-1, keepdims=True) + bf


# ---------------------------------------------------------------------------
# Tiled path: grid = (layer l, node-row tile r).
#
# Scratch:
#   hw_ref     : (2, Np, Hp) bf16  ping-pong buffer of H_prev @ W_l; slot l%2
#                holds layer l's operand, slot (l+1)%2 is filled per tile with
#                layer l+1's operand.
#   pooled_ref : (Gp, Hp) f32      incremental mean-pool accumulator.
# ---------------------------------------------------------------------------
def gcn_tiled_kernel(a_ref, hw0_ref, pool_ref, w_ref, b_ref, fc_ref, o_ref,
                     hw_ref, pooled_ref):
    l = pl.program_id(0)
    r = pl.program_id(1)
    n_layers = pl.num_programs(0)
    n_row_tiles = pl.num_programs(1)
    tm = a_ref.shape[0]                   # row tile (static, multiple of 128)

    read_slot = l % 2
    write_slot = (l + 1) % 2
    row0 = pl.multiple_of(r * tm, 128)

    @pl.when(jnp.logical_and(l == 0, r == 0))
    def _():
        # Seed layer 0's H@W with the wrapper-precomputed X @ W1, and zero the
        # VMEM-resident output block so the single final HBM writeback never
        # carries uninitialized data.
        hw_ref[0] = hw0_ref[...]
        o_ref[...] = jnp.zeros_like(o_ref)

    # GCNConv for this row tile: relu(A_hat[rows] @ (H W_l) + b_l), f32 acc.
    agg = jnp.dot(a_ref[...], hw_ref[read_slot],
                  preferred_element_type=jnp.float32)
    h_new = jnp.maximum(agg + b_ref[l], 0.0)               # (tm, Hp) f32
    # NOTE: padded (zero) rows of a_hat give h_new = relu(bias) != 0 here;
    # harmless because the padded *columns* of a_hat and pool are zero.

    # Non-final layers: immediately push this tile through W_{l+1}, amortizing
    # the per-layer H @ W matmul across row tiles (no layer-boundary bubble,
    # no separate f32 activation buffer).
    @pl.when(l < n_layers - 1)
    def _():
        w_next = w_ref[jnp.minimum(l, w_ref.shape[0] - 1)]   # W_{l+1} (bf16)
        hw_next = jnp.dot(h_new.astype(jnp.bfloat16), w_next,
                          preferred_element_type=jnp.float32)
        hw_ref[write_slot, pl.ds(row0, tm), :] = hw_next.astype(jnp.bfloat16)

    # Final layer: incremental mean-pool accumulation (pool streamed per tile),
    # then the fc head as a lane reduction in the very last grid step.
    @pl.when(l == n_layers - 1)
    def _():
        @pl.when(r == 0)
        def _():
            pooled_ref[...] = jnp.zeros_like(pooled_ref)

        pooled_ref[...] += jnp.dot(pool_ref[...], h_new,
                                   preferred_element_type=jnp.float32)

        @pl.when(r == n_row_tiles - 1)
        def _():
            g = o_ref.shape[0]
            pooled = pooled_ref[...][:g]
            wf = fc_ref[0:1, :]
            bf = fc_ref[1:2, 0:1]
            o_ref[...] = jnp.sum(pooled * wf, axis=-1, keepdims=True) + bf


# ---------------------------------------------------------------------------
# Wrapper: pack / pad operands and dispatch small vs. tiled path.
# ---------------------------------------------------------------------------
def gcn_model_forward(a_hat, pool, x, params, *, row_tile=256,
                      force_tiled=False):
    """Forward pass of GCNModel on dense operands.

    a_hat (N,N), pool (G,N), x (N,F) are f32; params holds w1,b1,w2,b2,w3,b3,
    wf,bf with bias shapes (1,H)/(1,1).
    row_tile: 256 is a good default for v6e (and v7x after VMEM reductions);
              use 128 on v5e.
    """
    n_nodes = x.shape[0]
    num_graphs = pool.shape[0]

    # Fold W1 into the wrapper: layer 0's H@W operand is X @ W1 (tiny matmul).
    hw0 = x.astype(jnp.float32) @ params["w1"].astype(jnp.float32)

    use_small = (not force_tiled) and (n_nodes <= 1024)

    if use_small:
        np_pad = _round_up(max(n_nodes, 1), 128)
    else:
        row_tile = max(128, _round_up(row_tile, 128))
        np_pad = _round_up(max(n_nodes, 1), row_tile)
    g_pad = _round_up(max(num_graphs, 1), 8)

    # --- pack / pad operands (lane-dense, bf16 where they feed the MXU) -----
    a_p = _pad2(a_hat, np_pad, np_pad, jnp.bfloat16)             # (Np, Np)
    hw0_p = _pad2(hw0, np_pad, LANE, jnp.bfloat16)               # (Np, Hp)
    pool_p = _pad2(pool, g_pad, np_pad, jnp.float32)             # (Gp, Np)
    w_slab = jnp.stack([_pad2(params["w2"], LANE, LANE, jnp.bfloat16),
                        _pad2(params["w3"], LANE, LANE, jnp.bfloat16)])
    b_slab = jnp.stack([_pad2(params["b1"].reshape(1, -1), 1, LANE),
                        _pad2(params["b2"].reshape(1, -1), 1, LANE),
                        _pad2(params["b3"].reshape(1, -1), 1, LANE)])
    fc_slab = jnp.zeros((2, LANE), jnp.float32)
    fc_slab = fc_slab.at[0, :params["wf"].shape[0]].set(
        params["wf"][:, 0].astype(jnp.float32))
    fc_slab = fc_slab.at[1, 0].set(
        jnp.asarray(params["bf"], jnp.float32).reshape(()))

    out_shape = jax.ShapeDtypeStruct((num_graphs, 1), jnp.float32)

    if use_small:
        return pl.pallas_call(gcn_small_kernel, out_shape=out_shape)(
            a_p, hw0_p, pool_p, w_slab, b_slab, fc_slab)

    n_row_tiles = np_pad // row_tile

    # Explicit scoped-VMEM budget with headroom: streamed tiles are
    # double-buffered by the pipeline, resident slabs counted twice as well
    # (constant index_map still allocates two buffers today).
    est = (2 * row_tile * np_pad * 2        # a_hat tiles (bf16)
           + 2 * np_pad * LANE * 2          # hw0 (bf16)
           + 2 * g_pad * row_tile * 4       # pool tiles (f32)
           + 2 * 2 * LANE * LANE * 2        # W2/W3 slab (bf16)
           + 2 * NUM_LAYERS * LANE * 4      # biases
           + 2 * 2 * LANE * 4               # fc slab
           + 2 * np_pad * LANE * 2          # hw ping-pong scratch (bf16)
           + g_pad * LANE * 4               # pooled scratch
           + 2 * num_graphs * 4)            # output block
    vmem_limit = int(min(100 * (1 << 20),
                         max(int(est * 1.5) + (4 << 20), 16 * (1 << 20))))

    return pl.pallas_call(
        gcn_tiled_kernel,
        out_shape=out_shape,
        grid_spec=pltpu.PrefetchScalarGridSpec(
            num_scalar_prefetch=0,
            grid=(NUM_LAYERS, n_row_tiles),
            in_specs=[
                pl.BlockSpec((row_tile, np_pad), lambda l, r: (r, 0)),   # a_hat
                pl.BlockSpec((np_pad, LANE), lambda l, r: (0, 0)),       # X@W1
                pl.BlockSpec((g_pad, row_tile), lambda l, r: (0, r)),    # pool
                pl.BlockSpec((2, LANE, LANE), lambda l, r: (0, 0, 0)),   # W2,W3
                pl.BlockSpec((NUM_LAYERS, 1, LANE), lambda l, r: (0, 0, 0)),
                pl.BlockSpec((2, LANE), lambda l, r: (0, 0)),            # fc
            ],
            out_specs=pl.BlockSpec((num_graphs, 1), lambda l, r: (0, 0)),
            scratch_shapes=[
                pltpu.VMEM((2, np_pad, LANE), jnp.bfloat16),   # H@W ping-pong
                pltpu.VMEM((g_pad, LANE), jnp.float32),        # pooled acc
            ],
        ),
        # Both axes "arbitrary": the row axis feeds a shared per-core scratch
        # consumed by the next layer, so it must stay sequential on one core.
        # TODO(synk): per-layer kernels with a 'parallel' row axis would let
        # v7x's two TensorCores each take half the rows.
        compiler_params=pltpu.CompilerParams(
            dimension_semantics=("arbitrary", "arbitrary"),
            vmem_limit_bytes=vmem_limit),
    )(a_p, hw0_p, pool_p, w_slab, b_slab, fc_slab)


# ---------------- plain-JAX glue (graph -> dense operands) ------------------

def build_normalized_adjacency(edge_index, num_nodes):
    """D^-1/2 (A + I) D^-1/2, as in PyG GCNConv with add_self_loops=True."""
    src, dst = edge_index
    a = jnp.zeros((num_nodes, num_nodes), jnp.float32)
    a = a.at[dst, src].add(1.0)                       # messages flow src -> dst
    a = a + jnp.eye(num_nodes, dtype=jnp.float32)     # self loops
    deg = a.sum(axis=1)
    d_inv_sqrt = jnp.where(deg > 0, 1.0 / jnp.sqrt(deg), 0.0)
    return d_inv_sqrt[:, None] * a * d_inv_sqrt[None, :]


def build_mean_pool_matrix(batch, num_graphs):
    onehot = (batch[None, :] == jnp.arange(num_graphs)[:, None]).astype(jnp.float32)
    counts = onehot.sum(axis=1, keepdims=True)
    return onehot / jnp.maximum(counts, 1.0)


def gcn_reference(a_hat, pool, x, params):
    h = x
    for wk, bk in (("w1", "b1"), ("w2", "b2"), ("w3", "b3")):
        h = jnp.maximum(a_hat @ (h @ params[wk]) + params[bk], 0.0)
    return pool @ h @ params["wf"] + params["bf"]


if __name__ == "__main__":
    input_dim, hidden_dim = 9, 64                      # module defaults

    key = jax.random.PRNGKey(0)
    keys = jax.random.split(key, 8)

    def glorot(k, shape):
        lim = (6.0 / (shape[0] + shape[1])) ** 0.5
        return jax.random.uniform(k, shape, jnp.float32, -lim, lim)

    params = {
        "w1": glorot(keys[0], (input_dim, hidden_dim)),
        "b1": jnp.zeros((1, hidden_dim), jnp.float32),
        "w2": glorot(keys[1], (hidden_dim, hidden_dim)),
        "b2": jnp.zeros((1, hidden_dim), jnp.float32),
        "w3": glorot(keys[2], (hidden_dim, hidden_dim)),
        "b3": jnp.zeros((1, hidden_dim), jnp.float32),
        "wf": glorot(keys[3], (hidden_dim, 1)),
        "bf": jax.random.uniform(keys[4], (1, 1), jnp.float32, -0.1, 0.1),
    }

    def make_chain_batch(num_graphs, nodes_per_graph, xkey):
        num_nodes = num_graphs * nodes_per_graph
        edges = []
        for g in range(num_graphs):
            base = g * nodes_per_graph
            for i in range(nodes_per_graph - 1):
                edges.append((base + i, base + i + 1))
                edges.append((base + i + 1, base + i))
        edge_index = jnp.array(edges, dtype=jnp.int32).T            # (2, E)
        batch = jnp.array(
            sum(([g] * nodes_per_graph for g in range(num_graphs)), []),
            dtype=jnp.int32)
        x = jax.random.normal(xkey, (num_nodes, input_dim), jnp.float32)
        a_hat = build_normalized_adjacency(edge_index, num_nodes)
        pool = build_mean_pool_matrix(batch, num_graphs)
        return a_hat, pool, x

    def check(out, ref, name):
        assert out.shape == ref.shape, f"{name}: shape {out.shape} vs {ref.shape}"
        assert out.dtype == jnp.float32, f"{name}: dtype {out.dtype}"
        err = float(jnp.max(jnp.abs(out - ref)))
        tol = 0.05 + 0.03 * float(jnp.max(jnp.abs(ref)))
        assert err < tol, f"{name}: max abs err {err} (tol {tol})"

    # Case 1: small batch (2 graphs x 16 nodes) -> resident single-shot path.
    a1, p1, x1 = make_chain_batch(2, 16, keys[5])
    out1 = gcn_model_forward(a1, p1, x1, params)
    jax.block_until_ready(out1)
    check(out1, gcn_reference(a1, p1, x1, params), "small path")

    # Case 2: 4 graphs x 72 nodes = 288 nodes, forced through the tiled grid
    # path (3 row tiles of 128) to exercise the H@W ping-pong and the
    # incremental pooling across tiles.
    a2, p2, x2 = make_chain_batch(4, 72, keys[6])
    out2 = gcn_model_forward(a2, p2, x2, params, row_tile=128, force_tiled=True)
    jax.block_until_ready(out2)
    check(out2, gcn_reference(a2, p2, x2, params), "tiled path")

    print("KERNEL_OK")
</pallas_src>

<mosaic_0001>
module attributes {stable_mosaic.version = 11 : i64} {
  func.func @gcn_small_kernel(%arg0: memref<128x128xbf16, #tpu.memory_space<vmem>>, %arg1: memref<128x128xbf16, #tpu.memory_space<vmem>>, %arg2: memref<8x128xf32, #tpu.memory_space<vmem>>, %arg3: memref<2x128x128xbf16, #tpu.memory_space<vmem>>, %arg4: memref<3x1x128xf32, #tpu.memory_space<vmem>>, %arg5: memref<2x128xf32, #tpu.memory_space<vmem>>, %arg6: memref<2x1xf32, #tpu.memory_space<vmem>>) attributes {dimension_semantics = [], scalar_prefetch = 0 : i64, scratch_operands = 0 : i64, tpu.core_type = #tpu.core_type<tc>} {
    %c0 = arith.constant 0 : index
    %c0_0 = arith.constant 0 : index
    %0 = vector.load %arg0[%c0, %c0_0] : memref<128x128xbf16, #tpu.memory_space<vmem>>, vector<128x128xbf16>
    %c0_1 = arith.constant 0 : index
    %c0_2 = arith.constant 0 : index
    %1 = vector.load %arg1[%c0_1, %c0_2] : memref<128x128xbf16, #tpu.memory_space<vmem>>, vector<128x128xbf16>
    %cst = arith.constant dense<0.000000e+00> : vector<128x128xf32>
    %2 = tpu.matmul %0, %1, %cst {dimension_numbers = #tpu.dot_dimension_numbers<[1], [0], [0], [1], [0, 0, 1, 1], [], []>} : vector<128x128xbf16>, vector<128x128xbf16>, vector<128x128xf32> -> vector<128x128xf32>
    %c0_3 = arith.constant 0 : index
    %c0_4 = arith.constant 0 : index
    %c0_5 = arith.constant 0 : index
    %3 = vector.load %arg4[%c0_3, %c0_4, %c0_5] : memref<3x1x128xf32, #tpu.memory_space<vmem>>, vector<1x1x128xf32>
    %4 = vector.shape_cast %3 : vector<1x1x128xf32> to vector<1x128xf32>
    %5 = vector.broadcast %4 : vector<1x128xf32> to vector<128x128xf32>
    %6 = arith.addf %2, %5 : vector<128x128xf32>
    %cst_6 = arith.constant 0.000000e+00 : f32
    %7 = vector.broadcast %cst_6 : f32 to vector<128x128xf32>
    %8 = arith.maximumf %6, %7 : vector<128x128xf32>
    %9 = arith.truncf %8 : vector<128x128xf32> to vector<128x128xbf16>
    %c0_7 = arith.constant 0 : index
    %c0_8 = arith.constant 0 : index
    %c0_9 = arith.constant 0 : index
    %10 = vector.load %arg3[%c0_7, %c0_8, %c0_9] : memref<2x128x128xbf16, #tpu.memory_space<vmem>>, vector<1x128x128xbf16>
    %11 = vector.shape_cast %10 : vector<1x128x128xbf16> to vector<128x128xbf16>
    %cst_10 = arith.constant dense<0.000000e+00> : vector<128x128xf32>
    %12 = tpu.matmul %9, %11, %cst_10 {dimension_numbers = #tpu.dot_dimension_numbers<[1], [0], [0], [1], [0, 0, 1, 1], [], []>} : vector<128x128xbf16>, vector<128x128xbf16>, vector<128x128xf32> -> vector<128x128xf32>
    %13 = arith.truncf %12 : vector<128x128xf32> to vector<128x128xbf16>
    %cst_11 = arith.constant dense<0.000000e+00> : vector<128x128xf32>
    %14 = tpu.matmul %0, %13, %cst_11 {dimension_numbers = #tpu.dot_dimension_numbers<[1], [0], [0], [1], [0, 0, 1, 1], [], []>} : vector<128x128xbf16>, vector<128x128xbf16>, vector<128x128xf32> -> vector<128x128xf32>
    %c1 = arith.constant 1 : index
    %c0_12 = arith.constant 0 : index
    %c0_13 = arith.constant 0 : index
    %15 = vector.load %arg4[%c1, %c0_12, %c0_13] : memref<3x1x128xf32, #tpu.memory_space<vmem>>, vector<1x1x128xf32>
    %16 = vector.shape_cast %15 : vector<1x1x128xf32> to vector<1x128xf32>
    %17 = vector.broadcast %16 : vector<1x128xf32> to vector<128x128xf32>
    %18 = arith.addf %14, %17 : vector<128x128xf32>
    %cst_14 = arith.constant 0.000000e+00 : f32
    %19 = vector.broadcast %cst_14 : f32 to vector<128x128xf32>
    %20 = arith.maximumf %18, %19 : vector<128x128xf32>
    %21 = arith.truncf %20 : vector<128x128xf32> to vector<128x128xbf16>
    %c1_15 = arith.constant 1 : index
    %c0_16 = arith.constant 0 : index
    %c0_17 = arith.constant 0 : index
    %22 = vector.load %arg3[%c1_15, %c0_16, %c0_17] : memref<2x128x128xbf16, #tpu.memory_space<vmem>>, vector<1x128x128xbf16>
    %23 = vector.shape_cast %22 : vector<1x128x128xbf16> to vector<128x128xbf16>
    %cst_18 = arith.constant dense<0.000000e+00> : vector<128x128xf32>
    %24 = tpu.matmul %21, %23, %cst_18 {dimension_numbers = #tpu.dot_dimension_numbers<[1], [0], [0], [1], [0, 0, 1, 1], [], []>} : vector<128x128xbf16>, vector<128x128xbf16>, vector<128x128xf32> -> vector<128x128xf32>
    %25 = arith.truncf %24 : vector<128x128xf32> to vector<128x128xbf16>
    %cst_19 = arith.constant dense<0.000000e+00> : vector<128x128xf32>
    %26 = tpu.matmul %0, %25, %cst_19 {dimension_numbers = #tpu.dot_dimension_numbers<[1], [0], [0], [1], [0, 0, 1, 1], [], []>} : vector<128x128xbf16>, vector<128x128xbf16>, vector<128x128xf32> -> vector<128x128xf32>
    %c2 = arith.constant 2 : index
    %c0_20 = arith.constant 0 : index
    %c0_21 = arith.constant 0 : index
    %27 = vector.load %arg4[%c2, %c0_20, %c0_21] : memref<3x1x128xf32, #tpu.memory_space<vmem>>, vector<1x1x128xf32>
    %28 = vector.shape_cast %27 : vector<1x1x128xf32> to vector<1x128xf32>
    %29 = vector.broadcast %28 : vector<1x128xf32> to vector<128x128xf32>
    %30 = arith.addf %26, %29 : vector<128x128xf32>
    %cst_22 = arith.constant 0.000000e+00 : f32
    %31 = vector.broadcast %cst_22 : f32 to vector<128x128xf32>
    %32 = arith.maximumf %30, %31 : vector<128x128xf32>
    %c0_23 = arith.constant 0 : index
    %c0_24 = arith.constant 0 : index
    %33 = vector.load %arg2[%c0_23, %c0_24] : memref<8x128xf32, #tpu.memory_space<vmem>>, vector<8x128xf32>
    %cst_25 = arith.constant dense<0.000000e+00> : vector<8x128xf32>
    %34 = tpu.matmul %33, %32, %cst_25 {dimension_numbers = #tpu.dot_dimension_numbers<[1], [0], [0], [1], [0, 0, 1, 1], [], []>} : vector<8x128xf32>, vector<128x128xf32>, vector<8x128xf32> -> vector<8x128xf32>
    %c0_26 = arith.constant 0 : index
    %c0_27 = arith.constant 0 : index
    %35 = vector.load %arg5[%c0_26, %c0_27] : memref<2x128xf32, #tpu.memory_space<vmem>>, vector<1x128xf32>
    %c1_28 = arith.constant 1 : index
    %c0_29 = arith.constant 0 : index
    %36 = vector.load %arg5[%c1_28, %c0_29] : memref<2x128xf32, #tpu.memory_space<vmem>>, vector<1x1xf32>
    %37 = vector.extract_strided_slice %34 {offsets = [0, 0], sizes = [2, 128], strides = [1, 1]} : vector<8x128xf32> to vector<2x128xf32>
    %38 = vector.broadcast %35 : vector<1x128xf32> to vector<2x128xf32>
    %39 = arith.mulf %37, %38 : vector<2x128xf32>
    %cst_30 = arith.constant dense<0.000000e+00> : vector<2xf32>
    %40 = vector.multi_reduction <add>, %39, %cst_30 [1] : vector<2x128xf32> to vector<2xf32>
    %41 = vector.shape_cast %40 : vector<2xf32> to vector<2x1xf32>
    %42 = vector.broadcast %36 : vector<1x1xf32> to vector<2x1xf32>
    %43 = arith.addf %41, %42 : vector<2x1xf32>
    %c0_31 = arith.constant 0 : index
    %c0_32 = arith.constant 0 : index
    %44 = vector.load %arg6[%c0_31, %c0_32] : memref<2x1xf32, #tpu.memory_space<vmem>>, vector<2x1xf32>
    tpu.vector_store %arg6[%c0_31, %c0_32], %43 {strides = array<i32>} : memref<2x1xf32, #tpu.memory_space<vmem>>, vector<2x1xf32>,
    return
  }
}

</mosaic_0001>

<bundles_post_ra>
// kernel: tpu_custom_call.1
= control target key start
LH: loop header
LB: loop body
LE: loop exit
PB: predicated region body
PF: predicated region fallthrough
CT: control target
= control target key end

     0   :  { %11 = vsyncpa [#allocation3], 0  ;;  %s1689_s0 = inlined_call_operand.hbm [shape: bf16[128,128], index: 0, kind: input, shape index: {}]   ;;  %s1690_s1 = inlined_call_operand.hbm [shape: bf16[128,128], index: 1, kind: input, shape index: {}]   ;;  %s1691_s2 = inlined_call_operand.hbm [shape: f32[8,128], index: 2, kind: input, shape index: {}]   ;;  %s1692_s3 = inlined_call_operand.hbm [shape: bf16[2,128,128], index: 3, kind: input, shape index: {}]   ;;  %s1693_s4 = inlined_call_operand.vmem [shape: f32[3,1,128], index: 4, kind: input, shape index: {}]   ;;  %s1694_s5 = inlined_call_operand.vmem [shape: f32[2,128], index: 5, kind: input, shape index: {}]   ;;  %s1695_s6 = inlined_call_operand.vmem [shape: f32[2,1], index: 6, kind: output, shape index: {}]  }
   0x1   :  { %12 = vsyncpa [#allocation5], 0 }
   0x2   :  { %13 = vsyncpa [#allocation8], 0  ;;  %s1508_s21 = smov [#allocation4]   ;;  %s1509_s23 = smov [#allocation2]  }
   0x3   :  { %s31_s22 = sshll.u32 %s1508_s21, 4  ;;  %s19_s24 = sshll.u32 %s1509_s23, 4  ;;  %s32_s22 = int_to_ptr.vmem [resolvable:$true] %s31_s22  ;;  %s1552_s24 = int_to_ptr.vmem [resolvable:$true] %s19_s24 }
   0x4   :  { %s1414_s27 = scalar_lea.hbm %s1690_s1, 1024 }
   0x5   :  { %p1415_p0 = scmp.ne.s32.totalorder %s1690_s1, %s1414_s27  ;;  %p1418_p1 = scmp.lt.u32.totalorder %s1414_s27, %s1690_s1 }
   0x7   :  { %p1420_p2 = pnand %p1418_p1, %p1415_p0 }
   0x9   :  { %1423 = shalt.err (!%p1420_p2)
}
   0xa   :  { %s1424_s8 = scalar_lea.vmem %s32_s22, 1024  ;;  %p1429_p4 = scmp.lt.s32.totalorder %s32_s22, %s32_s22 }
   0xb   :  { %p1425_p3 = scmp.ne.s32.totalorder %s32_s22, %s1424_s8  ;;  %p1430_p5 = scmp.lt.s32.totalorder %s1424_s8, %s1424_s8 }
   0xd   :  { %p1431_p6 = por %p1430_p5, %p1429_p4 }
   0xf   :  { %p1432_p7 = pnand %p1431_p6, %p1425_p3 }
  0x11   :  { %1435 = shalt.err (!%p1432_p7)
}
  0x12   :  { %s1510_s9 = smov 64   ;;  %s1511_s10 = smov 4  }
  0x13   :  { %37 = dma.hbm_to_vmem [thread:$0]  %s1690_s1, 1024, %s32_s22, [#allocation5], %s1510_s9, %s1510_s9, %s1511_s10  }
  0x14   :  { %s1436_s15 = scalar_lea.hbm %s1689_s0, 1024 }
  0x15   :  { %p1437_p8 = scmp.ne.s32.totalorder %s1689_s0, %s1436_s15  ;;  %p1440_p9 = scmp.lt.u32.totalorder %s1436_s15, %s1689_s0 }
  0x17   :  { %p1442_p10 = pnand %p1440_p9, %p1437_p8 }
  0x19   :  { %1445 = shalt.err (!%p1442_p10)
}
  0x1a   :  { %s1446_s20 = scalar_lea.vmem %s1552_s24, 1024  ;;  %p1451_p12 = scmp.lt.s32.totalorder %s1552_s24, %s1552_s24 }
  0x1b   :  { %p1447_p11 = scmp.ne.s32.totalorder %s1552_s24, %s1446_s20  ;;  %p1452_p13 = scmp.lt.s32.totalorder %s1446_s20, %s1446_s20 }
  0x1d   :  { %p1453_p0 = por %p1452_p13, %p1451_p12 }
  0x1f   :  { %p1454_p1 = pnand %p1453_p0, %p1447_p11 }
  0x21   :  { %1457 = shalt.err (!%p1454_p1)
}
  0x22   :  { %25 = dma.hbm_to_vmem [thread:$0]  %s1689_s0, 1024, %s1552_s24, [#allocation3], %s1510_s9, %s1510_s9, %s1511_s10  }
  0x23   :  { %s1512_s22 = smov [#allocation6]   ;;  %s1513_s25 = smov [#allocation7]  }
  0x24   :  { %s44_s23 = sshll.u32 %s1512_s22, 4  ;;  %s53_s26 = sshll.u32 %s1513_s25, 4  ;;  %s45_s23 = int_to_ptr.vmem [resolvable:$true] %s44_s23  ;;  %s1589_s26 = int_to_ptr.vmem [resolvable:$true] %s53_s26 }
  0x25   :  { %s1458_s29 = scalar_lea.hbm %s1691_s2, 128 }
  0x26   :  { %p1459_p2 = scmp.ne.s32.totalorder %s1691_s2, %s1458_s29  ;;  %p1462_p3 = scmp.lt.u32.totalorder %s1458_s29, %s1691_s2 }
  0x28   :  { %p1464_p4 = pnand %p1462_p3, %p1459_p2 }
  0x2a   :  { %1467 = shalt.err (!%p1464_p4)
}
  0x2b   :  { %s1468_s0 = scalar_lea.vmem %s45_s23, 128  ;;  %p1473_p6 = scmp.lt.s32.totalorder %s45_s23, %s45_s23 }
  0x2c   :  { %p1469_p5 = scmp.ne.s32.totalorder %s45_s23, %s1468_s0  ;;  %p1474_p7 = scmp.lt.s32.totalorder %s1468_s0, %s1468_s0 }
  0x2e   :  { %p1475_p8 = por %p1474_p7, %p1473_p6 }
  0x30   :  { %p1476_p9 = pnand %p1475_p8, %p1469_p5 }
  0x32   :  { %1479 = shalt.err (!%p1476_p9)
}
  0x33   :  { %47 = dma.hbm_to_vmem [thread:$0]  %s1691_s2, 128, %s45_s23, [#allocation5]  }
  0x34   :  { %s1480_s15 = scalar_lea.hbm %s1692_s3, 2048 }
  0x35   :  { %p1481_p10 = scmp.ne.s32.totalorder %s1692_s3, %s1480_s15  ;;  %p1484_p11 = scmp.lt.u32.totalorder %s1480_s15, %s1692_s3 }
  0x37   :  { %p1486_p12 = pnand %p1484_p11, %p1481_p10 }
  0x39   :  { %1489 = shalt.err (!%p1486_p12)
}
  0x3a   :  { %s1490_s20 = scalar_lea.vmem %s1589_s26, 2048  ;;  %p1495_p0 = scmp.lt.s32.totalorder %s1589_s26, %s1589_s26 }
  0x3b   :  { %p1491_p13 = scmp.ne.s32.totalorder %s1589_s26, %s1490_s20  ;;  %p1496_p1 = scmp.lt.s32.totalorder %s1490_s20, %s1490_s20 }
  0x3d   :  { %p1497_p2 = por %p1496_p1, %p1495_p0 }
  0x3f   :  { %p1498_p3 = pnand %p1497_p2, %p1491_p13 }
  0x41   :  { %1501 = shalt.err (!%p1498_p3)
}
  0x42   :  { %59 = dma.hbm_to_vmem [thread:$0]  %s1692_s3, 2048, %s1589_s26, [#allocation8], %s1510_s9, %s1510_s9, %s1511_s10  }
  0x43   :  { %1502 = dma.done.wait [#allocation3], 1024  }
  0x44   :  { %1503 = vsyncadd [#allocation3], 4294966272 }
  0x45   :  { %1504 = dma.done.wait [#allocation5], 1152  }
  0x46   :  { %1505 = vsyncadd [#allocation5], 4294966144 }
  0x47   :  { %1506 = dma.done.wait [#allocation8], 2048  }
  0x48   :  { %1507 = vsyncadd [#allocation8], 4294965248  ;;  %v1382_v0 = vld [vmem:[#allocation4] sm:$0xff]   ;;  %v1383_v1 = vld [vmem:[#allocation4 + $0x8] sm:$0xff]   ;;  %vm1515_vm0 = vmmov 0   ;;  %vm1000_vm1 = vcmask 1041408  }
  0x49   :  { %1154 = vmatprep.subr.bf16.mxu0 %v1382_v0  ;;  %v1384_v2 = vld [vmem:[#allocation4 + $0x10] sm:$0xff]   ;;  %v1385_v3 = vld [vmem:[#allocation4 + $0x18] sm:$0xff]   ;;  %v1623_v4 = vld [vmem:[#allocation2] sm:$0xff]   ;;  %vm1009_vm2 = vcmask 1024  }
  0x4a   :  { %1155 = vmatpush3.bf16.msra.mxu0 %v1382_v0  ;;  %1170 = vmatprep.mubr.bf16.mxu0 %v1623_v4  ;;  %v1386_v5 = vld [vmem:[#allocation4 + $0x20] sm:$0xff]   ;;  %v1387_v6 = vld [vmem:[#allocation4 + $0x28] sm:$0xff]   ;;  %v1399_v8 = vld [vmem:[#allocation7 + $0x8] sm:$0xff]  }
  0x4b   :  { %1156 = vmatprep.subr.bf16.mxu0 %v1383_v1  ;;  %v1398_v7 = vld [vmem:[#allocation7] sm:$0xff]   ;;  %v1388_v9 = vld [vmem:[#allocation4 + $0x30] sm:$0xff]   ;;  %v1400_v10 = vld [vmem:[#allocation7 + $0x10] sm:$0xff]  }
  0x4c   :  { %1186 = vmatprep.subr.bf16.mxu1 %v1398_v7  ;;  %v1389_v11 = vld [vmem:[#allocation4 + $0x38] sm:$0xff]   ;;  %v1401_v12 = vld [vmem:[#allocation7 + $0x18] sm:$0xff]   ;;  %v1402_v13 = vld [vmem:[#allocation7 + $0x20] sm:$0xff]  }
  0x4d   :  { %1187 = vmatpush3.bf16.msra.mxu1 %v1398_v7  ;;  %v1626_v14 = vld [vmem:[#allocation2 + $0x8] sm:$0xff]   ;;  %v1628_v15 = vld [vmem:[#allocation2 + $0x10] sm:$0xff]   ;;  %v1632_v17 = vld [vmem:[#allocation2 + $0x18] sm:$0xff]  }
  0x4e   :  { %1157 = vmatpush3.bf16.msra.mxu0 %v1383_v1  ;;  %1188 = vmatprep.subr.bf16.mxu1 %v1399_v8  ;;  %v1403_v16 = vld [vmem:[#allocation7 + $0x28] sm:$0xff]   ;;  %v1634_v18 = vld [vmem:[#allocation2 + $0x20] sm:$0xff]   ;;  %v1638_v19 = vld [vmem:[#allocation2 + $0x28] sm:$0xff]  }
  0x4f   :  { %1158 = vmatprep.subr.bf16.mxu0 %v1384_v2  ;;  %v1640_v20 = vld [vmem:[#allocation2 + $0x30] sm:$0xff]   ;;  %v1644_v21 = vld [vmem:[#allocation2 + $0x38] sm:$0xff]   ;;  %v1405_v23 = vld [vmem:[#allocation7 + $0x38] sm:$0xff]  }
  0x50   :  { %v1404_v22 = vld [vmem:[#allocation7 + $0x30] sm:$0xff]   ;;  %v1018_v24 = vld [vmem:[%s1693_s4] ss:$0 sm:$0xff] }
  0x51   :  { %1189 = vmatpush3.bf16.msra.mxu1 %v1399_v8 }
  0x52   :  { %1159 = vmatpush3.bf16.msra.mxu0 %v1384_v2  ;;  %1190 = vmatprep.subr.bf16.mxu1 %v1400_v10 }
  0x53   :  { %1160 = vmatprep.subr.bf16.mxu0 %v1385_v3 }
  0x55   :  { %1191 = vmatpush3.bf16.msra.mxu1 %v1400_v10 }
  0x56   :  { %1161 = vmatpush3.bf16.msra.mxu0 %v1385_v3  ;;  %1192 = vmatprep.subr.bf16.mxu1 %v1401_v12 }
  0x57   :  { %1162 = vmatprep.subr.bf16.mxu0 %v1386_v5 }
  0x59   :  { %1193 = vmatpush3.bf16.msra.mxu1 %v1401_v12 }
  0x5a   :  { %1163 = vmatpush3.bf16.msra.mxu0 %v1386_v5  ;;  %1194 = vmatprep.subr.bf16.mxu1 %v1402_v13 }
  0x5b   :  { %1164 = vmatprep.subr.bf16.mxu0 %v1387_v6 }
  0x5d   :  { %1195 = vmatpush3.bf16.msra.mxu1 %v1402_v13 }
  0x5e   :  { %1165 = vmatpush3.bf16.msra.mxu0 %v1387_v6  ;;  %1196 = vmatprep.subr.bf16.mxu1 %v1403_v16 }
  0x5f   :  { %1166 = vmatprep.subr.bf16.mxu0 %v1388_v9 }
  0x61   :  { %1197 = vmatpush3.bf16.msra.mxu1 %v1403_v16 }
  0x62   :  { %1167 = vmatpush3.bf16.msra.mxu0 %v1388_v9  ;;  %1198 = vmatprep.subr.bf16.mxu1 %v1404_v22 }
  0x63   :  { %1168 = vmatprep.subr.bf16.mxu0 %v1389_v11 }
  0x65   :  { %1199 = vmatpush3.bf16.msra.mxu1 %v1404_v22 }
  0x66   :  { %1169 = vmatpush3.bf16.msra.mxu0 %v1389_v11  ;;  %1200 = vmatprep.subr.bf16.mxu1 %v1405_v23 }
  0x69   :  { %1171 = vmatmul.mubr.bf16.vlgmr.msra.gmra.mrb[0].mxu0 %v1626_v14  ;;  %1201 = vmatpush3.bf16.msra.mxu1 %v1405_v23 }
  0x6a   :  { %1174 = vmatprep.mubr.bf16.mxu0 %v1628_v15 }
  0x71   :  { %1175 = vmatmul.mubr.bf16.gmra.mrb[4].mxu0 %v1632_v17 }
  0x72   :  { %1178 = vmatprep.mubr.bf16.mxu0 %v1634_v18 }
  0x79   :  { %1179 = vmatmul.mubr.bf16.gmra.mrb[8].mxu0 %v1638_v19 }
  0x7a   :  { %1182 = vmatprep.mubr.bf16.mxu0 %v1640_v20 }
  0x81   :  { %1183 = vmatmul.mubr.bf16.gmra.mrb[12].mxu0 %v1644_v21 }
  0x82   :  { %1234 = vmatprep.mubr.bf16.mxu0 %v1623_v4 }
 0x13c   :  { %v1172_v25 = vpop.f32.mrb[0].mxu0 }
 0x13d   :  { %v255_v26 = vadd.f32 %v1172_v25, %v1018_v24  ;;  %v246_v27 = vpop.f32.mrb[1].mxu0 }
 0x13e   :  { %v247_v28 = vadd.f32 %v1018_v24, %v246_v27  ;;  %v1173_v29 = vpop.f32.mrb[2].mxu0  ;;  %v1407_v27 = vld [vmem:[#allocation7 + $0x48] sm:$0xff]  }
 0x13f   :  { %v258_v30 = vadd.f32 %v1173_v29, %v1018_v24  ;;  %v249_v31 = vpop.f32.mrb[3].mxu0  ;;  %v311_v33 = vmax.f32 %v255_v26, 0.0  ;;  %v1406_v26 = vld [vmem:[#allocation7 + $0x40] sm:$0xff]   ;;  %v1409_v29 = vld [vmem:[#allocation7 + $0x58] sm:$0xff]  }
 0x140   :  { %v250_v32 = vadd.f32 %v1018_v24, %v249_v31  ;;  %v309_v35 = vmax.f32 %v247_v28, 0.0  ;;  %1250 = vmatprep.subr.bf16.mxu1 %v1406_v26  ;;  %v1408_v28 = vld [vmem:[#allocation7 + $0x50] sm:$0xff]  }
 0x141   :  { %v312_v34 = vmax.f32 %v258_v30, 0.0  ;;  %v1411_v30 = vld [vmem:[#allocation7 + $0x68] sm:$0xff]  }
 0x142   :  { %v310_v36 = vmax.f32 %v250_v32, 0.0 }
 0x143   :  { %v326_v37 = vpack.c.bf16 %v312_v34, %v311_v33 }
 0x144   :  { %v1176_v38 = vpop.f32.mrb[4].mxu0  ;;  %v325_v39 = vpack.c.bf16 %v310_v36, %v309_v35 }
 0x145   :  { %v271_v40 = vadd.f32 %v1176_v38, %v1018_v24  ;;  %v262_v41 = vpop.f32.mrb[5].mxu0 }
 0x146   :  { %v263_v42 = vadd.f32 %v1018_v24, %v262_v41  ;;  %v1177_v43 = vpop.f32.mrb[6].mxu0  ;;  %1202 = vmatprep.mubr.bf16.mxu1 %v325_v39 }
 0x147   :  { %v274_v44 = vadd.f32 %v1177_v43, %v1018_v24  ;;  %v265_v45 = vpop.f32.mrb[7].mxu0  ;;  %1203 = vmatmul.mubr.bf16.vlgmr.msra.gmra.mrb[0].mxu1 %v326_v37  ;;  %v315_v47 = vmax.f32 %v271_v40, 0.0 }
 0x148   :  { %v266_v46 = vadd.f32 %v1018_v24, %v265_v45  ;;  %v313_v49 = vmax.f32 %v263_v42, 0.0  ;;  %1251 = vmatpush3.bf16.msra.mxu1 %v1406_v26 }
 0x149   :  { %v316_v48 = vmax.f32 %v274_v44, 0.0  ;;  %1252 = vmatprep.subr.bf16.mxu1 %v1407_v27 }
 0x14a   :  { %v314_v50 = vmax.f32 %v266_v46, 0.0 }
 0x14b   :  { %v328_v51 = vpack.c.bf16 %v316_v48, %v315_v47 }
 0x14c   :  { %v327_v52 = vpack.c.bf16 %v314_v50, %v313_v49  ;;  %v1180_v53 = vpop.f32.mrb[8].mxu0  ;;  %1253 = vmatpush3.bf16.msra.mxu1 %v1407_v27 }
 0x14d   :  { %v287_v54 = vadd.f32 %v1180_v53, %v1018_v24  ;;  %v278_v55 = vpop.f32.mrb[9].mxu0  ;;  %1254 = vmatprep.subr.bf16.mxu1 %v1408_v28 }
 0x14e   :  { %v279_v56 = vadd.f32 %v1018_v24, %v278_v55  ;;  %v1181_v57 = vpop.f32.mrb[10].mxu0  ;;  %1206 = vmatprep.mubr.bf16.mxu1 %v327_v52  ;;  %v1412_v55 = vld [vmem:[#allocation7 + $0x70] sm:$0xff]  }
 0x14f   :  { %v290_v58 = vadd.f32 %v1181_v57, %v1018_v24  ;;  %v281_v59 = vpop.f32.mrb[11].mxu0  ;;  %1207 = vmatmul.mubr.bf16.gmra.mrb[4].mxu1 %v328_v51  ;;  %v319_v61 = vmax.f32 %v287_v54, 0.0  ;;  %v1044_v57 = vld [vmem:[%s1693_s4 + $0x1] ss:$0 sm:$0xff] }
 0x150   :  { %v282_v60 = vadd.f32 %v1018_v24, %v281_v59  ;;  %v317_v63 = vmax.f32 %v279_v56, 0.0  ;;  %1255 = vmatpush3.bf16.msra.mxu1 %v1408_v28  ;;  %v1413_v56 = vld [vmem:[#allocation7 + $0x78] sm:$0xff]  }
 0x151   :  { %v320_v62 = vmax.f32 %v290_v58, 0.0  ;;  %1256 = vmatprep.subr.bf16.mxu1 %v1409_v29 }
 0x152   :  { %v318_v0 = vmax.f32 %v282_v60, 0.0 }
 0x153   :  { %v330_v1 = vpack.c.bf16 %v320_v62, %v319_v61 }
 0x154   :  { %v329_v2 = vpack.c.bf16 %v318_v0, %v317_v63  ;;  %v1184_v3 = vpop.f32.mrb[12].mxu0  ;;  %1257 = vmatpush3.bf16.msra.mxu1 %v1409_v29 }
 0x155   :  { %v303_v5 = vadd.f32 %v1184_v3, %v1018_v24  ;;  %v294_v6 = vpop.f32.mrb[13].mxu0 }
 0x156   :  { %v295_v7 = vadd.f32 %v1018_v24, %v294_v6  ;;  %v1185_v8 = vpop.f32.mrb[14].mxu0  ;;  %1210 = vmatprep.mubr.bf16.mxu1 %v329_v2 }
 0x157   :  { %v306_v9 = vadd.f32 %v1185_v8, %v1018_v24  ;;  %v297_v10 = vpop.f32.mrb[15].mxu0  ;;  %1211 = vmatmul.mubr.bf16.gmra.mrb[8].mxu1 %v330_v1  ;;  %v323_v12 = vmax.f32 %v303_v5, 0.0 }
 0x158   :  { %v298_v11 = vadd.f32 %v1018_v24, %v297_v10  ;;  %v321_v16 = vmax.f32 %v295_v7, 0.0  ;;  %v1410_v24 = vld [vmem:[#allocation7 + $0x60] sm:$0xff]  }
 0x159   :  { %v324_v13 = vmax.f32 %v306_v9, 0.0  ;;  %1258 = vmatprep.subr.bf16.mxu1 %v1410_v24 }
 0x15a   :  { %v322_v22 = vmax.f32 %v298_v11, 0.0  ;;  %1259 = vmatpush3.bf16.msra.mxu1 %v1410_v24 }
 0x15b   :  { %v332_v23 = vpack.c.bf16 %v324_v13, %v323_v12  ;;  %1260 = vmatprep.subr.bf16.mxu1 %v1411_v30 }
 0x15c   :  { %v331_v25 = vpack.c.bf16 %v322_v22, %v321_v16 }
 0x15e   :  { %1214 = vmatprep.mubr.bf16.mxu1 %v331_v25  ;;  %1261 = vmatpush3.bf16.msra.mxu1 %v1411_v30 }
 0x15f   :  { %1215 = vmatmul.mubr.bf16.gmra.mrb[12].mxu1 %v332_v23  ;;  %1262 = vmatprep.subr.bf16.mxu1 %v1412_v55 }
 0x162   :  { %1263 = vmatpush3.bf16.msra.mxu1 %v1412_v55 }
 0x163   :  { %1264 = vmatprep.subr.bf16.mxu1 %v1413_v56 }
 0x166   :  { %1265 = vmatpush3.bf16.msra.mxu1 %v1413_v56 }
 0x21a   :  { %v1204_v31 = vpop.f32.mrb[0].mxu1 }
 0x21b   :  { %v431_v32 = vpop.f32.mrb[1].mxu1 }
 0x21c   :  { %v1205_v33 = vpop.f32.mrb[2].mxu1 }
 0x21d   :  { %v495_v34 = vpack.c.bf16 %v1205_v33, %v1204_v31  ;;  %v434_v35 = vpop.f32.mrb[3].mxu1 }
 0x21e   :  { %v494_v36 = vpack.c.bf16 %v434_v35, %v431_v32 }
 0x220   :  { %1218 = vmatprep.subr.bf16.mxu0 %v494_v36 }
 0x221   :  { %1219 = vmatpush3.bf16.msra.mxu0 %v494_v36 }
 0x222   :  { %v1208_v37 = vpop.f32.mrb[4].mxu1  ;;  %1220 = vmatprep.subr.bf16.mxu0 %v495_v34 }
 0x223   :  { %v447_v38 = vpop.f32.mrb[5].mxu1 }
 0x224   :  { %v1209_v39 = vpop.f32.mrb[6].mxu1 }
 0x225   :  { %v497_v40 = vpack.c.bf16 %v1209_v39, %v1208_v37  ;;  %v450_v41 = vpop.f32.mrb[7].mxu1  ;;  %1221 = vmatpush3.bf16.msra.mxu0 %v495_v34 }
 0x226   :  { %v496_v42 = vpack.c.bf16 %v450_v41, %v447_v38 }
 0x228   :  { %1222 = vmatprep.subr.bf16.mxu0 %v496_v42 }
 0x229   :  { %1223 = vmatpush3.bf16.msra.mxu0 %v496_v42 }
 0x22a   :  { %v1212_v43 = vpop.f32.mrb[8].mxu1  ;;  %1224 = vmatprep.subr.bf16.mxu0 %v497_v40 }
 0x22b   :  { %v463_v44 = vpop.f32.mrb[9].mxu1 }
 0x22c   :  { %v1213_v45 = vpop.f32.mrb[10].mxu1 }
 0x22d   :  { %v499_v46 = vpack.c.bf16 %v1213_v45, %v1212_v43  ;;  %v466_v47 = vpop.f32.mrb[11].mxu1  ;;  %1225 = vmatpush3.bf16.msra.mxu0 %v497_v40 }
 0x22e   :  { %v498_v48 = vpack.c.bf16 %v466_v47, %v463_v44 }
 0x230   :  { %1226 = vmatprep.subr.bf16.mxu0 %v498_v48 }
 0x231   :  { %1227 = vmatpush3.bf16.msra.mxu0 %v498_v48 }
 0x232   :  { %v1216_v49 = vpop.f32.mrb[12].mxu1  ;;  %1228 = vmatprep.subr.bf16.mxu0 %v499_v46 }
 0x233   :  { %v479_v50 = vpop.f32.mrb[13].mxu1 }
 0x234   :  { %v1217_v51 = vpop.f32.mrb[14].mxu1 }
 0x235   :  { %v501_v52 = vpack.c.bf16 %v1217_v51, %v1216_v49  ;;  %v482_v53 = vpop.f32.mrb[15].mxu1  ;;  %1229 = vmatpush3.bf16.msra.mxu0 %v499_v46 }
 0x236   :  { %v500_v54 = vpack.c.bf16 %v482_v53, %v479_v50 }
 0x238   :  { %1230 = vmatprep.subr.bf16.mxu0 %v500_v54 }
 0x239   :  { %1231 = vmatpush3.bf16.msra.mxu0 %v500_v54 }
 0x23a   :  { %1232 = vmatprep.subr.bf16.mxu0 %v501_v52 }
 0x23d   :  { %1233 = vmatpush3.bf16.msra.mxu0 %v501_v52 }
 0x240   :  { %1235 = vmatmul.mubr.bf16.vlgmr.msra.gmra.mrb[16].mxu0 %v1626_v14 }
 0x241   :  { %1238 = vmatprep.mubr.bf16.mxu0 %v1628_v15 }
 0x248   :  { %1239 = vmatmul.mubr.bf16.gmra.mrb[20].mxu0 %v1632_v17 }
 0x249   :  { %1242 = vmatprep.mubr.bf16.mxu0 %v1634_v18 }
 0x250   :  { %1243 = vmatmul.mubr.bf16.gmra.mrb[24].mxu0 %v1638_v19 }
 0x251   :  { %1246 = vmatprep.mubr.bf16.mxu0 %v1640_v20 }
 0x258   :  { %1247 = vmatmul.mubr.bf16.gmra.mrb[28].mxu0 %v1644_v21 }
 0x259   :  { %1298 = vmatprep.mubr.bf16.mxu0 %v1623_v4 }
 0x313   :  { %v1236_v58 = vpop.f32.mrb[16].mxu0 }
 0x314   :  { %v553_v59 = vadd.f32 %v1236_v58, %v1044_v57  ;;  %v544_v60 = vpop.f32.mrb[17].mxu0 }
 0x315   :  { %v545_v61 = vadd.f32 %v1044_v57, %v544_v60  ;;  %v1237_v62 = vpop.f32.mrb[18].mxu0 }
 0x316   :  { %v556_v63 = vadd.f32 %v1237_v62, %v1044_v57  ;;  %v547_v0 = vpop.f32.mrb[19].mxu0  ;;  %v609_v2 = vmax.f32 %v553_v59, 0.0 }
 0x317   :  { %v548_v1 = vadd.f32 %v1044_v57, %v547_v0  ;;  %v607_v3 = vmax.f32 %v545_v61, 0.0 }
 0x318   :  { %v610_v4 = vmax.f32 %v556_v63, 0.0 }
 0x319   :  { %v608_v5 = vmax.f32 %v548_v1, 0.0 }
 0x31a   :  { %v624_v6 = vpack.c.bf16 %v610_v4, %v609_v2 }
 0x31b   :  { %v623_v7 = vpack.c.bf16 %v608_v5, %v607_v3  ;;  %v1240_v8 = vpop.f32.mrb[20].mxu0 }
 0x31c   :  { %v569_v9 = vadd.f32 %v1240_v8, %v1044_v57  ;;  %v560_v10 = vpop.f32.mrb[21].mxu0 }
 0x31d   :  { %v561_v11 = vadd.f32 %v1044_v57, %v560_v10  ;;  %v1241_v12 = vpop.f32.mrb[22].mxu0  ;;  %1266 = vmatprep.mubr.bf16.mxu1 %v623_v7 }
 0x31e   :  { %v572_v13 = vadd.f32 %v1241_v12, %v1044_v57  ;;  %v563_v16 = vpop.f32.mrb[23].mxu0  ;;  %1267 = vmatmul.mubr.bf16.vlgmr.msra.gmra.mrb[16].mxu1 %v624_v6  ;;  %v613_v23 = vmax.f32 %v569_v9, 0.0 }
 0x31f   :  { %v564_v22 = vadd.f32 %v1044_v57, %v563_v16  ;;  %v611_v26 = vmax.f32 %v561_v11, 0.0 }
 0x320   :  { %v614_v25 = vmax.f32 %v572_v13, 0.0 }
 0x321   :  { %v612_v27 = vmax.f32 %v564_v22, 0.0 }
 0x322   :  { %v626_v28 = vpack.c.bf16 %v614_v25, %v613_v23  ;;  %v1514_v25 = vmov 0.0|0.0  }
 0x323   :  { %v625_v29 = vpack.c.bf16 %v612_v27, %v611_v26  ;;  %v1244_v24 = vpop.f32.mrb[24].mxu0  ;;  %1349 = vmatprep.subr.bf16.mxu1 %v1514_v25  ;;  %v1516_v26 = vmov 0.0  }
 0x324   :  { %v585_v30 = vadd.f32 %v1244_v24, %v1044_v57  ;;  %v576_v31 = vpop.f32.mrb[25].mxu0 }
 0x325   :  { %v577_v32 = vadd.f32 %v1044_v57, %v576_v31  ;;  %v1245_v33 = vpop.f32.mrb[26].mxu0  ;;  %1270 = vmatprep.mubr.bf16.mxu1 %v625_v29 }
 0x326   :  { %v588_v34 = vadd.f32 %v1245_v33, %v1044_v57  ;;  %v579_v35 = vpop.f32.mrb[27].mxu0  ;;  %1271 = vmatmul.mubr.bf16.gmra.mrb[20].mxu1 %v626_v28  ;;  %v617_v37 = vmax.f32 %v585_v30, 0.0 }
 0x327   :  { %v580_v36 = vadd.f32 %v1044_v57, %v579_v35  ;;  %v615_v39 = vmax.f32 %v577_v32, 0.0 }
 0x328   :  { %v618_v38 = vmax.f32 %v588_v34, 0.0 }
 0x329   :  { %v616_v40 = vmax.f32 %v580_v36, 0.0 }
 0x32a   :  { %v628_v41 = vpack.c.bf16 %v618_v38, %v617_v37 }
 0x32b   :  { %v627_v42 = vpack.c.bf16 %v616_v40, %v615_v39  ;;  %v1248_v43 = vpop.f32.mrb[28].mxu0 }
 0x32c   :  { %v601_v44 = vadd.f32 %v1248_v43, %v1044_v57  ;;  %v592_v45 = vpop.f32.mrb[29].mxu0 }
 0x32d   :  { %v593_v46 = vadd.f32 %v1044_v57, %v592_v45  ;;  %v1249_v47 = vpop.f32.mrb[30].mxu0  ;;  %1274 = vmatprep.mubr.bf16.mxu1 %v627_v42 }
 0x32e   :  { %v604_v48 = vadd.f32 %v1249_v47, %v1044_v57  ;;  %v595_v49 = vpop.f32.mrb[31].mxu0  ;;  %1275 = vmatmul.mubr.bf16.gmra.mrb[24].mxu1 %v628_v41  ;;  %v621_v51 = vmax.f32 %v601_v44, 0.0 }
 0x32f   :  { %v596_v50 = vadd.f32 %v1044_v57, %v595_v49  ;;  %v619_v53 = vmax.f32 %v593_v46, 0.0 }
 0x330   :  { %v622_v52 = vmax.f32 %v604_v48, 0.0 }
 0x331   :  { %v620_v54 = vmax.f32 %v596_v50, 0.0 }
 0x332   :  { %v630_v55 = vpack.c.bf16 %v622_v52, %v621_v51 }
 0x333   :  { %v629_v56 = vpack.c.bf16 %v620_v54, %v619_v53 }
 0x335   :  { %1278 = vmatprep.mubr.bf16.mxu1 %v629_v56 }
 0x336   :  { %1279 = vmatmul.mubr.bf16.gmra.mrb[28].mxu1 %v630_v55 }
 0x337   :  { %1346 = vmatprep.mubr.msk.f32.mxu1 %vm1515_vm0, %v1516_v26 }
 0x3f1   :  { %v1268_v58 = vpop.f32.mrb[16].mxu1 }
 0x3f2   :  { %v730_v59 = vpop.f32.mrb[17].mxu1 }
 0x3f3   :  { %v1269_v60 = vpop.f32.mrb[18].mxu1 }
 0x3f4   :  { %v794_v61 = vpack.c.bf16 %v1269_v60, %v1268_v58  ;;  %v733_v62 = vpop.f32.mrb[19].mxu1 }
 0x3f5   :  { %v793_v63 = vpack.c.bf16 %v733_v62, %v730_v59 }
 0x3f7   :  { %1282 = vmatprep.subr.bf16.mxu0 %v793_v63 }
 0x3f8   :  { %1283 = vmatpush3.bf16.msra.mxu0 %v793_v63 }
 0x3f9   :  { %v1272_v0 = vpop.f32.mrb[20].mxu1  ;;  %1284 = vmatprep.subr.bf16.mxu0 %v794_v61 }
 0x3fa   :  { %v746_v1 = vpop.f32.mrb[21].mxu1 }
 0x3fb   :  { %v1273_v57 = vpop.f32.mrb[22].mxu1 }
 0x3fc   :  { %v796_v2 = vpack.c.bf16 %v1273_v57, %v1272_v0  ;;  %v749_v4 = vpop.f32.mrb[23].mxu1  ;;  %1285 = vmatpush3.bf16.msra.mxu0 %v794_v61 }
 0x3fd   :  { %v795_v3 = vpack.c.bf16 %v749_v4, %v746_v1 }
 0x3ff   :  { %1286 = vmatprep.subr.bf16.mxu0 %v795_v3 }
 0x400   :  { %1287 = vmatpush3.bf16.msra.mxu0 %v795_v3 }
 0x401   :  { %v1276_v5 = vpop.f32.mrb[24].mxu1  ;;  %1288 = vmatprep.subr.bf16.mxu0 %v796_v2 }
 0x402   :  { %v762_v6 = vpop.f32.mrb[25].mxu1 }
 0x403   :  { %v1277_v7 = vpop.f32.mrb[26].mxu1 }
 0x404   :  { %v798_v8 = vpack.c.bf16 %v1277_v7, %v1276_v5  ;;  %v765_v9 = vpop.f32.mrb[27].mxu1  ;;  %1289 = vmatpush3.bf16.msra.mxu0 %v796_v2 }
 0x405   :  { %v797_v10 = vpack.c.bf16 %v765_v9, %v762_v6 }
 0x407   :  { %1290 = vmatprep.subr.bf16.mxu0 %v797_v10 }
 0x408   :  { %1291 = vmatpush3.bf16.msra.mxu0 %v797_v10 }
 0x409   :  { %v1280_v11 = vpop.f32.mrb[28].mxu1  ;;  %1292 = vmatprep.subr.bf16.mxu0 %v798_v8 }
 0x40a   :  { %v778_v12 = vpop.f32.mrb[29].mxu1 }
 0x40b   :  { %v1281_v13 = vpop.f32.mrb[30].mxu1 }
 0x40c   :  { %v800_v16 = vpack.c.bf16 %v1281_v13, %v1280_v11  ;;  %v781_v22 = vpop.f32.mrb[31].mxu1  ;;  %1293 = vmatpush3.bf16.msra.mxu0 %v798_v8  ;;  %v1055_v13 = vld [vmem:[%s1694_s5] ss:$0 sm:$0xff] }
 0x40d   :  { %v799_v23 = vpack.c.bf16 %v781_v22, %v778_v12  ;;  %v922_v12 = vld [vmem:[#allocation6] sm:$0xff] }
 0x40f   :  { %1294 = vmatprep.subr.bf16.mxu0 %v799_v23 }
 0x410   :  { %1295 = vmatpush3.bf16.msra.mxu0 %v799_v23 }
 0x411   :  { %1296 = vmatprep.subr.bf16.mxu0 %v800_v16 }
 0x414   :  { %1297 = vmatpush3.bf16.msra.mxu0 %v800_v16 }
 0x417   :  { %1299 = vmatmul.mubr.bf16.vlgmr.msra.gmra.mrb[32].mxu0 %v1626_v14  ;;  %v1054_v14 = vld [vmem:[%s1693_s4 + $0x2] ss:$0 sm:$0xff] }
 0x418   :  { %1302 = vmatprep.mubr.bf16.mxu0 %v1628_v15 }
 0x41f   :  { %1303 = vmatmul.mubr.bf16.gmra.mrb[36].mxu0 %v1632_v17 }
 0x420   :  { %1306 = vmatprep.mubr.bf16.mxu0 %v1634_v18 }
 0x427   :  { %1307 = vmatmul.mubr.bf16.gmra.mrb[40].mxu0 %v1638_v19 }
 0x428   :  { %1310 = vmatprep.mubr.bf16.mxu0 %v1640_v20 }
 0x42f   :  { %1311 = vmatmul.mubr.bf16.gmra.mrb[44].mxu0 %v1644_v21 }
 0x4ea   :  { %v1300_v15 = vpop.f32.mrb[32].mxu0 }
 0x4eb   :  { %v852_v17 = vadd.f32 %v1300_v15, %v1054_v14  ;;  %v843_v27 = vpop.f32.mrb[33].mxu0 }
 0x4ec   :  { %v844_v18 = vadd.f32 %v1054_v14, %v843_v27  ;;  %v1301_v28 = vpop.f32.mrb[34].mxu0 }
 0x4ed   :  { %v855_v19 = vadd.f32 %v1301_v28, %v1054_v14  ;;  %v846_v29 = vpop.f32.mrb[35].mxu0  ;;  %v908_v24 = vmax.f32 %v852_v17, 0.0 }
 0x4ee   :  { %v847_v20 = vadd.f32 %v1054_v14, %v846_v29  ;;  %v906_v30 = vmax.f32 %v844_v18, 0.0 }
 0x4ef   :  { %v909_v21 = vmax.f32 %v855_v19, 0.0 }
 0x4f0   :  { %v907_v31 = vmax.f32 %v847_v20, 0.0 }
 0x4f1   :  { %v1353_v32 = vpack.c.bf16 %v909_v21, %v908_v24 }
 0x4f2   :  { %v1350_v33 = vpack.c.bf16 %v907_v31, %v906_v30  ;;  %v1304_v34 = vpop.f32.mrb[36].mxu0 }
 0x4f3   :  { %v868_v35 = vadd.f32 %v1304_v34, %v1054_v14  ;;  %v859_v36 = vpop.f32.mrb[37].mxu0 }
 0x4f4   :  { %v860_v37 = vadd.f32 %v1054_v14, %v859_v36  ;;  %v1305_v38 = vpop.f32.mrb[38].mxu0  ;;  %1351 = vmatpush3.bf16.msra.mxu1 %v1350_v33 }
 0x4f5   :  { %v871_v39 = vadd.f32 %v1305_v38, %v1054_v14  ;;  %v862_v40 = vpop.f32.mrb[39].mxu0  ;;  %1352 = vmatprep.subr.bf16.mxu1 %v1514_v25  ;;  %v912_v42 = vmax.f32 %v868_v35, 0.0 }
 0x4f6   :  { %v863_v41 = vadd.f32 %v1054_v14, %v862_v40  ;;  %v910_v44 = vmax.f32 %v860_v37, 0.0 }
 0x4f7   :  { %v913_v43 = vmax.f32 %v871_v39, 0.0 }
 0x4f8   :  { %v911_v45 = vmax.f32 %v863_v41, 0.0  ;;  %1354 = vmatpush3.bf16.msra.mxu1 %v1353_v32 }
 0x4f9   :  { %v1359_v46 = vpack.c.bf16 %v913_v43, %v912_v42  ;;  %1355 = vmatprep.subr.bf16.mxu1 %v1514_v25 }
 0x4fa   :  { %v1356_v47 = vpack.c.bf16 %v911_v45, %v910_v44  ;;  %v1308_v48 = vpop.f32.mrb[40].mxu0 }
 0x4fb   :  { %v884_v49 = vadd.f32 %v1308_v48, %v1054_v14  ;;  %v875_v50 = vpop.f32.mrb[41].mxu0 }
 0x4fc   :  { %v876_v51 = vadd.f32 %v1054_v14, %v875_v50  ;;  %v1309_v52 = vpop.f32.mrb[42].mxu0  ;;  %1357 = vmatpush3.bf16.msra.mxu1 %v1356_v47 }
 0x4fd   :  { %v887_v53 = vadd.f32 %v1309_v52, %v1054_v14  ;;  %v878_v54 = vpop.f32.mrb[43].mxu0  ;;  %1358 = vmatprep.subr.bf16.mxu1 %v1514_v25  ;;  %v916_v56 = vmax.f32 %v884_v49, 0.0 }
 0x4fe   :  { %v879_v55 = vadd.f32 %v1054_v14, %v878_v54  ;;  %v914_v59 = vmax.f32 %v876_v51, 0.0 }
 0x4ff   :  { %v917_v58 = vmax.f32 %v887_v53, 0.0 }
 0x500   :  { %v915_v60 = vmax.f32 %v879_v55, 0.0  ;;  %1360 = vmatpush3.bf16.msra.mxu1 %v1359_v46 }
 0x501   :  { %v1365_v61 = vpack.c.bf16 %v917_v58, %v916_v56  ;;  %1361 = vmatprep.subr.bf16.mxu1 %v1514_v25 }
 0x502   :  { %v1362_v62 = vpack.c.bf16 %v915_v60, %v914_v59  ;;  %v1312_v63 = vpop.f32.mrb[44].mxu0 }
 0x503   :  { %v900_v0 = vadd.f32 %v1312_v63, %v1054_v14  ;;  %v891_v1 = vpop.f32.mrb[45].mxu0 }
 0x504   :  { %v892_v57 = vadd.f32 %v1054_v14, %v891_v1  ;;  %v1313_v2 = vpop.f32.mrb[46].mxu0  ;;  %1363 = vmatpush3.bf16.msra.mxu1 %v1362_v62 }
 0x505   :  { %v903_v4 = vadd.f32 %v1313_v2, %v1054_v14  ;;  %v894_v3 = vpop.f32.mrb[47].mxu0  ;;  %1364 = vmatprep.subr.bf16.mxu1 %v1514_v25  ;;  %v920_v6 = vmax.f32 %v900_v0, 0.0 }
 0x506   :  { %v895_v5 = vadd.f32 %v1054_v14, %v894_v3  ;;  %v918_v8 = vmax.f32 %v892_v57, 0.0  ;;  %v1056_v14 = vld [vmem:[%s1694_s5 + $0x1] ss:$0 sm:$0xff] }
 0x507   :  { %v921_v7 = vmax.f32 %v903_v4, 0.0 }
 0x508   :  { %v919_v9 = vmax.f32 %v895_v5, 0.0  ;;  %1366 = vmatpush3.bf16.msra.mxu1 %v1365_v61 }
 0x509   :  { %v1371_v10 = vpack.c.bf16 %v921_v7, %v920_v6  ;;  %1367 = vmatprep.subr.bf16.mxu1 %v1514_v25 }
 0x50a   :  { %v1368_v11 = vpack.c.bf16 %v919_v9, %v918_v8 }
 0x50c   :  { %1369 = vmatpush3.bf16.msra.mxu1 %v1368_v11 }
 0x50d   :  { %1370 = vmatprep.subr.bf16.mxu1 %v1514_v25 }
 0x510   :  { %1372 = vmatpush3.bf16.msra.mxu1 %v1371_v10 }
 0x513   :  { %1347 = vmatmul.mubr.f32.vlgmr.msra.gmra.mrb[32].mxu1 %v922_v12 }
 0x5e6   :  { %v989_v16 = vpop.f32.mrb[32].mxu1 }
 0x5e7   :  { %v999_v22 = vmul.f32 %v1055_v13, %v989_v16  ;;  %v1348_v23 = vpop.f32.mrb[33].mxu1 }
 0x5e9   :  { %v1001_v26 = vsel %vm1000_vm1, %v999_v22, 0.0 }
 0x5ea   :  { %1002 = vadd.xlane.f32.xlu0 %v1001_v26 }
 0x677   :  { %v1003_v15 = vpop.xlane.xlu0 %1002 }
 0x678   :  { %v1008_v25 = vadd.f32 %v1056_v14, %v1003_v15 }
 0x67a   :  { %1010 = vst.msk [vmem:[%s1695_s6] sm:$0x3] %vm1009_vm2, %v1008_v25 }
 0x67b   :  { %1015 = vsyncpa [#allocation3], 1 }
 0x67c   :  { %1016 = vsyncpa [#allocation5], 1 }
 0x67d   :  { %1017 = vsyncpa [#allocation8], 1 }

</bundles_post_ra>
